<compile_context>
chip_gen: v7x
topology: tpu7x:2x2x1
jax: 0.10.0
libtpu: 0.0.40
codegen_flags: <defaults>
</compile_context>

<pallas_src>
import functools

import jax
import jax.numpy as jnp
import numpy as np
from jax.experimental import pallas as pl
from jax.experimental.pallas import tpu as pltpu


def _grid3d_kernel(xyz_ref, grid_ref, out_ref, *, D, H, W):
    # xyz_ref : (3, TN) f32   rows = (d-coord, h-coord, w-coord), lane-dense
    # grid_ref: (D, H*W) f32  grid.reshape(D, H*W), no transpose
    # out_ref : (1, TN) f32   lane-dense sampled features
    xyz = xyz_ref[...]
    g = grid_ref[...]
    TN = xyz.shape[1]
    HW = H * W

    # align_corners=True unnormalization: [-1, 1] -> [0, size-1]   (all (1, TN))
    zc = (xyz[0:1, :] + 1.0) * (0.5 * (D - 1))
    yc = (xyz[1:2, :] + 1.0) * (0.5 * (H - 1))
    xc = (xyz[2:3, :] + 1.0) * (0.5 * (W - 1))

    z0f = jnp.floor(zc); fz = zc - z0f; z0 = z0f.astype(jnp.int32)
    y0f = jnp.floor(yc); fy = yc - y0f; y0 = y0f.astype(jnp.int32)
    x0f = jnp.floor(xc); fx = xc - x0f; x0 = x0f.astype(jnp.int32)

    # ---- H / W weighted one-hots at natural sizes (O((H+W)*TN) VPU work) ----
    h_iota = jax.lax.broadcasted_iota(jnp.int32, (H, TN), 0)
    w_iota = jax.lax.broadcasted_iota(jnp.int32, (W, TN), 0)
    wy = (jnp.where(h_iota == y0, 1.0 - fy, 0.0) +
          jnp.where(h_iota == y0 + 1, fy, 0.0))                   # (H, TN)
    wx = (jnp.where(w_iota == x0, 1.0 - fx, 0.0) +
          jnp.where(w_iota == x0 + 1, fx, 0.0))                   # (W, TN)

    # Single O(HW*TN) multiply: outer product over (H, W), collapse to (HW, TN).
    # ayx[h*W + w, n] = wy[h, n] * wx[w, n]
    ayx = (wy[:, None, :] * wx[None, :, :]).reshape(HW, TN)       # (HW, TN)

    # ---- D-axis weighted one-hot (epilogue weights) ----
    d_iota = jax.lax.broadcasted_iota(jnp.int32, (D, TN), 0)
    az = (jnp.where(d_iota == z0, 1.0 - fz, 0.0) +
          jnp.where(d_iota == z0 + 1, fz, 0.0))                   # (D, TN)

    # ---- MXU contraction over K = HW (not K = D):  (D, HW) @ (HW, TN) ----
    # HIGHEST keeps full f32 fidelity (needed for the 1e-4 test tolerance);
    # the MXU is not the binding slot at these sizes.
    m = jnp.dot(g, ayx,
                preferred_element_type=jnp.float32,
                precision=jax.lax.Precision.HIGHEST)              # (D, TN)

    # ---- epilogue: weight by az, small sublane reduce over D ----
    out_ref[...] = jnp.sum(az * m, axis=0, keepdims=True).astype(out_ref.dtype)


def grid3d_forward(xyz, grid, *, tile_n=512):
    """Pallas equivalent of Grid3D.forward with decoder=None.

    xyz:  (..., 3) float32 query coordinates in [-1, 1]
    grid: (1, 1, D, H, W) float32 learned feature grid
    returns: xyz.shape[:-1] float32 sampled features
    """
    D, H, W = grid.shape[2:]
    HW = H * W
    out_struct_shape = xyz.shape[:-1]

    xyz_flat = xyz.reshape(-1, 3).astype(jnp.float32)
    N = xyz_flat.shape[0]

    # Tile over queries: big tiles amortize per-step overhead, but cap so that
    # there are >= 2 grid steps when N allows it (v7x megacore), and keep the
    # lane count a multiple of 128.
    tn = min(int(tile_n), 128 * pl.cdiv(pl.cdiv(N, 2), 128))
    tn = max(128, 128 * pl.cdiv(tn, 128))
    num_blocks = pl.cdiv(N, tn)
    n_pad = num_blocks * tn

    # Pad with zeros (a valid in-range coordinate); padded results are discarded.
    xyz_pad = jnp.pad(xyz_flat, ((0, n_pad - N), (0, 0)))
    xyz_t = xyz_pad.T                                             # (3, n_pad) lane-dense
    grid_d_hw = grid.reshape(D, HW).astype(jnp.float32)           # (D, HW), no transpose

    # VMEM budget: resident grid + double-buffered coord/out tiles + live
    # (HW, TN)/(D|H|W, TN) f32 temporaries, with headroom.  Keeps larger
    # resolutions from tripping the default scoped VMEM cap (16/32 MiB).
    tn_bytes = 4 * tn
    vmem_est = (2 * 4 * D * HW
                + 2 * 3 * tn_bytes
                + 2 * 1 * tn_bytes
                + 6 * HW * tn_bytes
                + 12 * max(D, H, W) * tn_bytes)
    vmem_limit = int(min(64 << 20, max(2 * vmem_est, 16 << 20)))

    cost = pl.CostEstimate(
        flops=int(num_blocks * tn * (2 * D * HW + 4 * HW + 8 * (D + H + W))),
        transcendentals=0,
        bytes_accessed=int(4 * (3 * n_pad + n_pad + D * HW)),
    )

    kernel = functools.partial(_grid3d_kernel, D=D, H=H, W=W)
    out = pl.pallas_call(
        kernel,
        out_shape=jax.ShapeDtypeStruct((1, n_pad), jnp.float32),
        grid=(num_blocks,),
        in_specs=[
            pl.BlockSpec((3, tn), lambda i: (0, i)),    # query coords, tiled
            pl.BlockSpec((D, HW), lambda i: (0, 0)),    # grid, VMEM-resident
        ],
        out_specs=pl.BlockSpec((1, tn), lambda i: (0, i)),
        compiler_params=pltpu.CompilerParams(
            dimension_semantics=("parallel",),
            vmem_limit_bytes=vmem_limit),
        cost_estimate=cost,
    )(xyz_t, grid_d_hw)

    # decoder is None -> features.squeeze(-1)
    return out.reshape(-1)[:N].reshape(out_struct_shape)


def _reference(xyz, grid):
    """Pure-JAX reference of F.grid_sample(..., bilinear, align_corners=True, zeros)."""
    D, H, W = grid.shape[2:]
    g = grid[0, 0]
    shape = xyz.shape[:-1]
    p = xyz.reshape(-1, 3).astype(jnp.float32)
    zc = (p[:, 0] + 1.0) * 0.5 * (D - 1)
    yc = (p[:, 1] + 1.0) * 0.5 * (H - 1)
    xc = (p[:, 2] + 1.0) * 0.5 * (W - 1)
    z0 = jnp.floor(zc).astype(jnp.int32)
    y0 = jnp.floor(yc).astype(jnp.int32)
    x0 = jnp.floor(xc).astype(jnp.int32)
    fz = zc - z0
    fy = yc - y0
    fx = xc - x0
    out = jnp.zeros(p.shape[0], jnp.float32)
    for dz in (0, 1):
        for dy in (0, 1):
            for dx in (0, 1):
                d, h, w = z0 + dz, y0 + dy, x0 + dx
                wgt = ((fz if dz else 1 - fz) *
                       (fy if dy else 1 - fy) *
                       (fx if dx else 1 - fx))
                valid = ((d >= 0) & (d < D) & (h >= 0) & (h < H) &
                         (w >= 0) & (w < W))
                dc = jnp.clip(d, 0, D - 1)
                hc = jnp.clip(h, 0, H - 1)
                wc = jnp.clip(w, 0, W - 1)
                val = g[dc, hc, wc]
                out = out + jnp.where(valid, wgt, 0.0) * val
    return out.reshape(shape)


if __name__ == "__main__":
    key = jax.random.PRNGKey(0)
    k_grid, k_xyz = jax.random.split(key)

    # Module __init__: grid = Parameter(zeros([1, 1, *resolution])) + init_weight;
    # we use a deterministic random init standing in for init_weight.
    resolution = (8, 8, 8)
    grid = 0.1 * jax.random.normal(k_grid, (1, 1, *resolution), jnp.float32)

    # Query coordinates in [-1.1, 1.1] (exercises the zero-padding path too).
    xyz = jax.random.uniform(k_xyz, (2, 16, 3), jnp.float32,
                             minval=-1.1, maxval=1.1)

    out = grid3d_forward(xyz, grid)
    out = jax.block_until_ready(out)

    ref = _reference(xyz, grid)
    np.testing.assert_allclose(np.asarray(out), np.asarray(ref),
                               rtol=1e-4, atol=1e-4)
    assert out.shape == xyz.shape[:-1]

    print("KERNEL_OK")
</pallas_src>

<mosaic_0001>
module attributes {stable_mosaic.version = 11 : i64} {
  func.func @_grid3d_kernel(%arg0: i32, %arg1: memref<3x128xf32, #tpu.memory_space<vmem>>, %arg2: memref<8x64xf32, #tpu.memory_space<vmem>>, %arg3: memref<1x128xf32, #tpu.memory_space<vmem>>) attributes {dimension_semantics = [#tpu.dimension_semantics<parallel>], iteration_bounds = array<i64: 1>, scalar_prefetch = 0 : i64, scratch_operands = 0 : i64, tpu.core_type = #tpu.core_type<tc>, window_params = [{transform_indices = @transform_0, window_bounds = array<i64: 3, 128>}, {pipeline_mode = #tpu.pipeline_mode<synchronous>, transform_indices = @transform_1, window_bounds = array<i64: 8, 64>}, {transform_indices = @transform_2, window_bounds = array<i64: 1, 128>}]} {
    %c0 = arith.constant 0 : index
    %c0_0 = arith.constant 0 : index
    %0 = vector.load %arg1[%c0, %c0_0] : memref<3x128xf32, #tpu.memory_space<vmem>>, vector<3x128xf32>
    %c0_1 = arith.constant 0 : index
    %c0_2 = arith.constant 0 : index
    %1 = vector.load %arg2[%c0_1, %c0_2] : memref<8x64xf32, #tpu.memory_space<vmem>>, vector<8x64xf32>
    %2 = vector.extract_strided_slice %0 {offsets = [0, 0], sizes = [1, 128], strides = [1, 1]} : vector<3x128xf32> to vector<1x128xf32>
    %cst = arith.constant 1.000000e+00 : f32
    %3 = vector.broadcast %cst : f32 to vector<1x128xf32>
    %4 = arith.addf %2, %3 : vector<1x128xf32>
    %cst_3 = arith.constant 3.500000e+00 : f32
    %5 = vector.broadcast %cst_3 : f32 to vector<1x128xf32>
    %6 = arith.mulf %4, %5 : vector<1x128xf32>
    %7 = vector.extract_strided_slice %0 {offsets = [1, 0], sizes = [1, 128], strides = [1, 1]} : vector<3x128xf32> to vector<1x128xf32>
    %cst_4 = arith.constant 1.000000e+00 : f32
    %8 = vector.broadcast %cst_4 : f32 to vector<1x128xf32>
    %9 = arith.addf %7, %8 : vector<1x128xf32>
    %cst_5 = arith.constant 3.500000e+00 : f32
    %10 = vector.broadcast %cst_5 : f32 to vector<1x128xf32>
    %11 = arith.mulf %9, %10 : vector<1x128xf32>
    %12 = vector.extract_strided_slice %0 {offsets = [2, 0], sizes = [1, 128], strides = [1, 1]} : vector<3x128xf32> to vector<1x128xf32>
    %cst_6 = arith.constant 1.000000e+00 : f32
    %13 = vector.broadcast %cst_6 : f32 to vector<1x128xf32>
    %14 = arith.addf %12, %13 : vector<1x128xf32>
    %cst_7 = arith.constant 3.500000e+00 : f32
    %15 = vector.broadcast %cst_7 : f32 to vector<1x128xf32>
    %16 = arith.mulf %14, %15 : vector<1x128xf32>
    %17 = math.floor %6 : vector<1x128xf32>
    %18 = arith.subf %6, %17 : vector<1x128xf32>
    %19 = arith.fptosi %17 : vector<1x128xf32> to vector<1x128xi32>
    %20 = math.floor %11 : vector<1x128xf32>
    %21 = arith.subf %11, %20 : vector<1x128xf32>
    %22 = arith.fptosi %20 : vector<1x128xf32> to vector<1x128xi32>
    %23 = math.floor %16 : vector<1x128xf32>
    %24 = arith.subf %16, %23 : vector<1x128xf32>
    %25 = arith.fptosi %23 : vector<1x128xf32> to vector<1x128xi32>
    %26 = tpu.iota {dimensions = array<i32: 0>} : vector<8x128xi32>
    %27 = tpu.iota {dimensions = array<i32: 0>} : vector<8x128xi32>
    %28 = vector.broadcast %22 : vector<1x128xi32> to vector<8x128xi32>
    %29 = arith.cmpi eq, %26, %28 : vector<8x128xi32>
    %cst_8 = arith.constant 1.000000e+00 : f32
    %30 = vector.broadcast %cst_8 : f32 to vector<1x128xf32>
    %31 = arith.subf %30, %21 : vector<1x128xf32>
    %cst_9 = arith.constant 0.000000e+00 : f32
    %32 = vector.shape_cast %31 : vector<1x128xf32> to vector<1x128xf32>
    %33 = vector.broadcast %32 : vector<1x128xf32> to vector<8x128xf32>
    %34 = vector.broadcast %cst_9 : f32 to vector<8x128xf32>
    %35 = arith.select %29, %33, %34 : vector<8x128xi1>, vector<8x128xf32>
    %c1_i32 = arith.constant 1 : i32
    %36 = vector.broadcast %c1_i32 : i32 to vector<1x128xi32>
    %37 = arith.addi %22, %36 : vector<1x128xi32>
    %38 = vector.broadcast %37 : vector<1x128xi32> to vector<8x128xi32>
    %39 = arith.cmpi eq, %26, %38 : vector<8x128xi32>
    %cst_10 = arith.constant 0.000000e+00 : f32
    %40 = vector.shape_cast %21 : vector<1x128xf32> to vector<1x128xf32>
    %41 = vector.broadcast %40 : vector<1x128xf32> to vector<8x128xf32>
    %42 = vector.broadcast %cst_10 : f32 to vector<8x128xf32>
    %43 = arith.select %39, %41, %42 : vector<8x128xi1>, vector<8x128xf32>
    %44 = arith.addf %35, %43 : vector<8x128xf32>
    %45 = vector.broadcast %25 : vector<1x128xi32> to vector<8x128xi32>
    %46 = arith.cmpi eq, %27, %45 : vector<8x128xi32>
    %cst_11 = arith.constant 1.000000e+00 : f32
    %47 = vector.broadcast %cst_11 : f32 to vector<1x128xf32>
    %48 = arith.subf %47, %24 : vector<1x128xf32>
    %cst_12 = arith.constant 0.000000e+00 : f32
    %49 = vector.shape_cast %48 : vector<1x128xf32> to vector<1x128xf32>
    %50 = vector.broadcast %49 : vector<1x128xf32> to vector<8x128xf32>
    %51 = vector.broadcast %cst_12 : f32 to vector<8x128xf32>
    %52 = arith.select %46, %50, %51 : vector<8x128xi1>, vector<8x128xf32>
    %c1_i32_13 = arith.constant 1 : i32
    %53 = vector.broadcast %c1_i32_13 : i32 to vector<1x128xi32>
    %54 = arith.addi %25, %53 : vector<1x128xi32>
    %55 = vector.broadcast %54 : vector<1x128xi32> to vector<8x128xi32>
    %56 = arith.cmpi eq, %27, %55 : vector<8x128xi32>
    %cst_14 = arith.constant 0.000000e+00 : f32
    %57 = vector.shape_cast %24 : vector<1x128xf32> to vector<1x128xf32>
    %58 = vector.broadcast %57 : vector<1x128xf32> to vector<8x128xf32>
    %59 = vector.broadcast %cst_14 : f32 to vector<8x128xf32>
    %60 = arith.select %56, %58, %59 : vector<8x128xi1>, vector<8x128xf32>
    %61 = arith.addf %52, %60 : vector<8x128xf32>
    %62 = vector.shape_cast %44 : vector<8x128xf32> to vector<8x1x128xf32>
    %63 = vector.shape_cast %61 : vector<8x128xf32> to vector<1x8x128xf32>
    %64 = vector.broadcast %62 : vector<8x1x128xf32> to vector<8x8x128xf32>
    %65 = vector.broadcast %63 : vector<1x8x128xf32> to vector<8x8x128xf32>
    %66 = arith.mulf %64, %65 : vector<8x8x128xf32>
    %67 = vector.shape_cast %66 : vector<8x8x128xf32> to vector<64x128xf32>
    %68 = tpu.iota {dimensions = array<i32: 0>} : vector<8x128xi32>
    %69 = vector.broadcast %19 : vector<1x128xi32> to vector<8x128xi32>
    %70 = arith.cmpi eq, %68, %69 : vector<8x128xi32>
    %cst_15 = arith.constant 1.000000e+00 : f32
    %71 = vector.broadcast %cst_15 : f32 to vector<1x128xf32>
    %72 = arith.subf %71, %18 : vector<1x128xf32>
    %cst_16 = arith.constant 0.000000e+00 : f32
    %73 = vector.shape_cast %72 : vector<1x128xf32> to vector<1x128xf32>
    %74 = vector.broadcast %73 : vector<1x128xf32> to vector<8x128xf32>
    %75 = vector.broadcast %cst_16 : f32 to vector<8x128xf32>
    %76 = arith.select %70, %74, %75 : vector<8x128xi1>, vector<8x128xf32>
    %c1_i32_17 = arith.constant 1 : i32
    %77 = vector.broadcast %c1_i32_17 : i32 to vector<1x128xi32>
    %78 = arith.addi %19, %77 : vector<1x128xi32>
    %79 = vector.broadcast %78 : vector<1x128xi32> to vector<8x128xi32>
    %80 = arith.cmpi eq, %68, %79 : vector<8x128xi32>
    %cst_18 = arith.constant 0.000000e+00 : f32
    %81 = vector.shape_cast %18 : vector<1x128xf32> to vector<1x128xf32>
    %82 = vector.broadcast %81 : vector<1x128xf32> to vector<8x128xf32>
    %83 = vector.broadcast %cst_18 : f32 to vector<8x128xf32>
    %84 = arith.select %80, %82, %83 : vector<8x128xi1>, vector<8x128xf32>
    %85 = arith.addf %76, %84 : vector<8x128xf32>
    %cst_19 = arith.constant dense<0.000000e+00> : vector<8x128xf32>
    %86 = tpu.matmul %1, %67, %cst_19 {dimension_numbers = #tpu.dot_dimension_numbers<[1], [0], [0], [1], [0, 0, 1, 1], [], []>, precision = #tpu.contract_precision<fp32>} : vector<8x64xf32>, vector<64x128xf32>, vector<8x128xf32> -> vector<8x128xf32>
    %87 = arith.mulf %85, %86 : vector<8x128xf32>
    %cst_20 = arith.constant dense<0.000000e+00> : vector<128xf32>
    %88 = vector.multi_reduction <add>, %87, %cst_20 [0] : vector<8x128xf32> to vector<128xf32>
    %89 = vector.shape_cast %88 : vector<128xf32> to vector<1x128xf32>
    %c0_21 = arith.constant 0 : index
    %c0_22 = arith.constant 0 : index
    %90 = vector.load %arg3[%c0_21, %c0_22] : memref<1x128xf32, #tpu.memory_space<vmem>>, vector<1x128xf32>
    tpu.vector_store %arg3[%c0_21, %c0_22], %89 {strides = array<i32>} : memref<1x128xf32, #tpu.memory_space<vmem>>, vector<1x128xf32>,
    return
  }
  func.func @transform_0(%arg0: i32) -> (i32, i32) {
    %c0_i32 = arith.constant 0 : i32
    %c0_i32_0 = arith.constant 0 : i32
    return %c0_i32, %arg0 : i32, i32
  }
  func.func @transform_1(%arg0: i32) -> (i32, i32) {
    %c0_i32 = arith.constant 0 : i32
    %c0_i32_0 = arith.constant 0 : i32
    %c0_i32_1 = arith.constant 0 : i32
    return %c0_i32, %c0_i32_0 : i32, i32
  }
  func.func @transform_2(%arg0: i32) -> (i32, i32) {
    %c0_i32 = arith.constant 0 : i32
    %c0_i32_0 = arith.constant 0 : i32
    return %c0_i32, %arg0 : i32, i32
  }
}

</mosaic_0001>

<bundles_post_ra>
// kernel: tpu_custom_call.1
= control target key start
LH: loop header
LB: loop body
LE: loop exit
PB: predicated region body
PF: predicated region fallthrough
CT: control target
= control target key end

     0   :  { %7 = vsyncpa [#allocation3], 0  ;;  %s1316_s0 = inlined_call_operand.hbm [shape: f32[3,128], index: 0, kind: input, shape index: {}]   ;;  %s1317_s1 = inlined_call_operand.hbm [shape: f32[8,64], index: 1, kind: input, shape index: {}]   ;;  %s1318_s2 = inlined_call_operand.hbm [shape: f32[1,128], index: 2, kind: output, shape index: {}]  }
   0x1   :  { %8 = vsyncpa [#allocation6], 0 }
   0x2   :  { %9 = vsyncpa [#allocation4], 0  ;;  %s1103_s9 = smov [#allocation2]   ;;  %s1104_s11 = smov [#allocation5]  }
   0x3   :  { %s16_s10 = sshll.u32 %s1103_s9, 4  ;;  %s26_s12 = sshll.u32 %s1104_s11, 4  ;;  %s17_s10 = int_to_ptr.vmem [resolvable:$true] %s16_s10  ;;  %s27_s12 = int_to_ptr.vmem [resolvable:$true] %s26_s12 }
   0x4   :  { %s1031_s15 = scalar_lea.hbm %s1316_s0, 64 }
   0x5   :  { %p1032_p0 = scmp.ne.s32.totalorder %s1316_s0, %s1031_s15  ;;  %p1035_p1 = scmp.lt.u32.totalorder %s1031_s15, %s1316_s0 }
   0x7   :  { %p1037_p2 = pnand %p1035_p1, %p1032_p0 }
   0x9   :  { %1040 = shalt.err (!%p1037_p2)
}
   0xa   :  { %s1041_s20 = scalar_lea.vmem %s17_s10, 64  ;;  %p1046_p4 = scmp.lt.s32.totalorder %s17_s10, %s17_s10 }
   0xb   :  { %p1042_p3 = scmp.ne.s32.totalorder %s17_s10, %s1041_s20  ;;  %p1047_p5 = scmp.lt.s32.totalorder %s1041_s20, %s1041_s20 }
   0xd   :  { %p1048_p6 = por %p1047_p5, %p1046_p4 }
   0xf   :  { %p1049_p7 = pnand %p1048_p6, %p1042_p3 }
  0x11   :  { %1052 = shalt.err (!%p1049_p7)
}
  0x12   :  { %19 = dma.hbm_to_vmem [thread:$0]  %s1316_s0, 64, %s17_s10, [#allocation3]  }
  0x13   :  { %s1053_s25 = scalar_lea.hbm %s1317_s1, 128 }
  0x14   :  { %p1054_p8 = scmp.ne.s32.totalorder %s1317_s1, %s1053_s25  ;;  %p1057_p9 = scmp.lt.u32.totalorder %s1053_s25, %s1317_s1 }
  0x16   :  { %p1059_p10 = pnand %p1057_p9, %p1054_p8 }
  0x18   :  { %1062 = shalt.err (!%p1059_p10)
}
  0x19   :  { %s1063_s30 = scalar_lea.vmem %s27_s12, 128  ;;  %p1068_p12 = scmp.lt.s32.totalorder %s27_s12, %s27_s12 }
  0x1a   :  { %p1064_p11 = scmp.ne.s32.totalorder %s27_s12, %s1063_s30  ;;  %p1069_p13 = scmp.lt.s32.totalorder %s1063_s30, %s1063_s30 }
  0x1c   :  { %p1070_p0 = por %p1069_p13, %p1068_p12 }
  0x1e   :  { %p1071_p1 = pnand %p1070_p0, %p1064_p11 }
  0x20   :  { %1074 = shalt.err (!%p1071_p1)
}
  0x21   :  { %29 = dma.hbm_to_vmem [thread:$0]  %s1317_s1, 128, %s27_s12, [#allocation6]  }
  0x22   :  { %1097 = dma.done.wait [#allocation3], 64  }
  0x23   :  { %1098 = vsyncadd [#allocation3], 4294967232 }
  0x24   :  { %1099 = dma.done.wait [#allocation6], 128  }
  0x25   :  { %1100 = vsyncadd [#allocation6], 4294967168  ;;  %v1105_v0 = vmov 0.0|0.0   ;;  %vm1106_vm0 = vmmov 0   ;;  %v1107_v1 = vmov 0.0   ;;  %v43_v2 = vlaneseq  ;;  %v37_v35 = vld [vmem:[#allocation5] sm:$0xff] }
  0x26   :  { %941 = vmatprep.subr.bf16.mxu1 %v1105_v0  ;;  %977 = vmatprep.subr.bf16.mxu0 %v1105_v0  ;;  %v36_v3 = vld [vmem:[#allocation2] sm:$0x7]  ;;  %v1108_v8 = vmov 1966171168   ;;  %vm208_vm5 = vcmask 523264   ;;  %s1109_s1 = smov [#allocation7]  }
  0x27   :  { %843 = vmatprep.mubr.msk.f32.mxu1 %vm1106_vm0, %v1107_v1  ;;  %900 = vmatprep.mubr.msk.f32.mxu0 %vm1106_vm0, %v1107_v1  ;;  %v38_v4 = vadd.f32 1.0, %v36_v3  ;;  %v1155_v6 = vshrl.u32 %v43_v2, 7  ;;  %v92_v9 = vunpack.c.l.s4 %v1108_v8  ;;  %v210_v40 = vsel %vm208_vm5, %v37_v35, 0  ;;  %s763_s4 = sshll.u32 %s1109_s1, 4  ;;  %s764_s4 = int_to_ptr.vmem [resolvable:$true] %s763_s4 }
  0x28   :  { %v1189_v53 = vand.u32 4294901760, %v210_v40  ;;  %s1075_s5 = scalar_lea.vmem %s764_s4, 16  ;;  %s1079_s6 = scalar_lea.vmem %s764_s4, 32 }
  0x29   :  { %v39_v5 = vmul.f32 3.5, %v38_v4  ;;  %v47_v12 = vsub.s32 1, %v1155_v6  ;;  %v70_v13 = vsub.s32 2, %v1155_v6  ;;  %v93_v16 = vunpack.c.0.s8 %v92_v9  ;;  %p1076_p2 = scmp.ne.s32.totalorder %s764_s4, %s1075_s5  ;;  %p1080_p3 = scmp.lt.s32.totalorder %s764_s4, %s764_s4 }
  0x2a   :  { %v1183_v33 = vsub.s32 0, %v1155_v6  ;;  %p1081_p4 = scmp.lt.s32.totalorder %s1079_s6, %s1075_s5 }
  0x2b   :  { %v40_v7 = vfloor.f32 %v39_v5  ;;  %v96_v27 = vsub.s32 %v93_v16, %v1155_v6 }
  0x2c   :  { %p1082_p5 = por %p1081_p4, %p1080_p3 }
  0x2d   :  { %v1157_v10 = vsub.f32 %v39_v5, %v40_v7  ;;  %v1022_v11 = vtrunc.f32 %v40_v7  ;;  %v1198_v7 = vsub.f32 %v210_v40, %v1189_v53 }
  0x2e   :  { %p1083_p6 = pnand %p1082_p5, %p1076_p2 }
  0x2f   :  { %v1161_v14 = vcvt.f32.s32 %v1022_v11  ;;  %v1164_v15 = vsub.f32 1.0, %v1157_v10  ;;  %v65_v21 = vrot.slane %v1157_v10, %v47_v12  ;;  %v86_v26 = vrot.slane %v1157_v10, %v70_v13 }
  0x31   :  { %v48_v17 = vrot.slane %v1161_v14, %v47_v12  ;;  %v54_v18 = vrot.slane %v1164_v15, %v47_v12  ;;  %v1169_v19 = vadd.s32 1, %v1161_v14  ;;  %v71_v20 = vrot.slane %v1161_v14, %v70_v13 }
  0x32   :  { %v76_v25 = vrot.slane %v1164_v15, %v70_v13 }
  0x33   :  { %vm49_vm1 = vcmp.eq.s32.totalorder %v1155_v6, %v48_v17  ;;  %v60_v22 = vrot.slane %v1169_v19, %v47_v12  ;;  %v81_v23 = vrot.slane %v1169_v19, %v70_v13  ;;  %vm72_vm3 = vcmp.eq.s32.totalorder %v1155_v6, %v71_v20 }
  0x34   :  { %v55_v24 = vsel %vm49_vm1, %v54_v18, 0.0  ;;  %v77_v30 = vsel %vm72_vm3, %v76_v25, 0.0  ;;  %v287_v25 = vand.u32 4294901760, %v1198_v7 }
  0x35   :  { %vm61_vm2 = vcmp.eq.s32.totalorder %v1155_v6, %v60_v22  ;;  %vm82_vm4 = vcmp.eq.s32.totalorder %v1155_v6, %v81_v23 }
  0x36   :  { %v66_v28 = vsel %vm61_vm2, %v65_v21, 0.0  ;;  %v87_v31 = vsel %vm82_vm4, %v86_v26, 0.0 }
  0x37   :  { %v67_v29 = vadd.f32 %v66_v28, %v55_v24  ;;  %v88_v36 = vadd.f32 %v87_v31, %v77_v30 }
  0x39   :  { %v97_v32 = vrot.slane %v67_v29, %v96_v27  ;;  %v90_v34 = vcombine.high %v67_v29, %v67_v29 }
  0x3b   :  { %v105_v37 = vcombine.high %v97_v32, %v97_v32  ;;  %v113_v38 = vrot.slane %v97_v32, %v96_v27  ;;  %v104_v39 = vrot.slane %v90_v34, %v96_v27 }
  0x3d   :  { %v127_v41 = vrot.slane %v105_v37, %v96_v27  ;;  %v142_v42 = vrot.slane %v113_v38, %v1183_v33  ;;  %v135_v43 = vcombine.high %v113_v38, %v113_v38  ;;  %v106_v44 = vcombine.high %v104_v39, %v104_v39 }
  0x3e   :  { %v120_v45 = vrot.slane %v104_v39, %v96_v27 }
  0x3f   :  { %v146_v46 = vrot.slane %v127_v41, %v1183_v33  ;;  %v179_v47 = vmul.f32 %v142_v42, %v88_v36  ;;  %v137_v48 = vcombine.high %v127_v41, %v127_v41  ;;  %v150_v49 = vrot.slane %v135_v43, %v1183_v33 }
  0x40   :  { %v134_v50 = vrot.slane %v106_v44, %v96_v27  ;;  %v158_v51 = vrot.slane %v120_v45, %v1183_v33  ;;  %v136_v52 = vcombine.high %v120_v45, %v120_v45 }
  0x41   :  { %v180_v54 = vmul.f32 %v146_v46, %v88_v36  ;;  %v213_v55 = vand.u32 4294901760, %v179_v47  ;;  %v154_v56 = vrot.slane %v137_v48, %v1183_v33  ;;  %v181_v57 = vmul.f32 %v150_v49, %v88_v36 }
  0x42   :  { %v162_v58 = vrot.slane %v134_v50, %v1183_v33  ;;  %v183_v59 = vmul.f32 %v158_v51, %v88_v36  ;;  %v138_v60 = vcombine.high %v134_v50, %v134_v50  ;;  %v166_v61 = vrot.slane %v136_v52, %v1183_v33 }
  0x43   :  { %v216_v62 = vand.u32 4294901760, %v180_v54  ;;  %v1194_v63 = vsub.f32 %v179_v47, %v213_v55  ;;  %v182_v2 = vmul.f32 %v154_v56, %v88_v36  ;;  %v219_v3 = vand.u32 4294901760, %v181_v57 }
  0x44   :  { %v184_v4 = vmul.f32 %v162_v58, %v88_v36  ;;  %v170_v5 = vrot.slane %v138_v60, %v1183_v33  ;;  %v225_v12 = vand.u32 4294901760, %v183_v59  ;;  %v185_v17 = vmul.f32 %v166_v61, %v88_v36 }
  0x45   :  { %v1200_v8 = vpack.c.bf16 %v216_v62, %v213_v55  ;;  %v1202_v9 = vsub.f32 %v180_v54, %v216_v62  ;;  %v222_v11 = vand.u32 4294901760, %v182_v2  ;;  %v1204_v13 = vsub.f32 %v181_v57, %v219_v3 }
  0x46   :  { %v228_v16 = vand.u32 4294901760, %v184_v4  ;;  %v186_v18 = vmul.f32 %v170_v5, %v88_v36  ;;  %v298_v22 = vand.u32 4294901760, %v1194_v63  ;;  %v1216_v24 = vsub.f32 %v183_v59, %v225_v12 }
  0x47   :  { %943 = vmatpush3.bf16.msra.mxu1 %v1200_v8  ;;  %979 = vmatpush3.bf16.msra.mxu0 %v1200_v8  ;;  %v1208_v20 = vpack.c.bf16 %v222_v11, %v219_v3  ;;  %v1210_v21 = vsub.f32 %v182_v2, %v222_v11  ;;  %v305_v23 = vand.u32 4294901760, %v1202_v9  ;;  %v231_v26 = vand.u32 4294901760, %v185_v17 }
  0x48   :  { %944 = vmatprep.subr.bf16.mxu1 %v1105_v0  ;;  %980 = vmatprep.subr.bf16.mxu0 %v1105_v0  ;;  %v234_v27 = vand.u32 4294901760, %v186_v18  ;;  %v299_v28 = vsub.f32 %v1194_v63, %v298_v22  ;;  %v1223_v30 = vpack.c.bf16 %v228_v16, %v225_v12  ;;  %v1225_v31 = vsub.f32 %v184_v4, %v228_v16 }
  0x49   :  { %v306_v29 = vsub.f32 %v1202_v9, %v305_v23  ;;  %v312_v32 = vand.u32 4294901760, %v1204_v13  ;;  %v319_v34 = vand.u32 4294901760, %v1210_v21  ;;  %v1231_v35 = vsub.f32 %v185_v17, %v231_v26 }
  0x4a   :  { %v288_v36 = vsub.f32 %v1198_v7, %v287_v25  ;;  %v1234_v37 = vpack.c.bf16 %v234_v27, %v231_v26  ;;  %v300_v38 = vand.u32 4294901760, %v299_v28  ;;  %v326_v40 = vand.u32 4294901760, %v1216_v24 }
  0x4b   :  { %946 = vmatpush3.bf16.msra.mxu1 %v1208_v20  ;;  %982 = vmatpush3.bf16.msra.mxu0 %v1208_v20  ;;  %v307_v39 = vand.u32 4294901760, %v306_v29  ;;  %v1239_v41 = vsub.f32 %v186_v18, %v234_v27  ;;  %v313_v42 = vsub.f32 %v1204_v13, %v312_v32  ;;  %v320_v43 = vsub.f32 %v1210_v21, %v319_v34 }
  0x4c   :  { %947 = vmatprep.subr.bf16.mxu1 %v1105_v0  ;;  %983 = vmatprep.subr.bf16.mxu0 %v1105_v0  ;;  %v333_v44 = vand.u32 4294901760, %v1225_v31  ;;  %v289_v45 = vand.u32 4294901760, %v288_v36  ;;  %v990_v47 = vpack.c.bf16 %v305_v23, %v298_v22  ;;  %v327_v48 = vsub.f32 %v1216_v24, %v326_v40 }
  0x4d   :  { %v954_v46 = vpack.c.bf16 %v307_v39, %v300_v38  ;;  %v340_v49 = vand.u32 4294901760, %v1231_v35  ;;  %v314_v50 = vand.u32 4294901760, %v313_v42  ;;  %v321_v51 = vand.u32 4294901760, %v320_v43 }
  0x4e   :  { %v334_v52 = vsub.f32 %v1225_v31, %v333_v44  ;;  %v347_v54 = vand.u32 4294901760, %v1239_v41  ;;  %v993_v55 = vpack.c.bf16 %v319_v34, %v312_v32  ;;  %v328_v56 = vand.u32 4294901760, %v327_v48 }
  0x4f   :  { %949 = vmatpush3.bf16.msra.mxu1 %v1223_v30  ;;  %985 = vmatpush3.bf16.msra.mxu0 %v1223_v30  ;;  %v957_v57 = vpack.c.bf16 %v321_v51, %v314_v50  ;;  %v341_v59 = vsub.f32 %v1231_v35, %v340_v49  ;;  %v996_v62 = vpack.c.bf16 %v333_v44, %v326_v40 }
  0x50   :  { %950 = vmatprep.subr.bf16.mxu1 %v1105_v0  ;;  %986 = vmatprep.subr.bf16.mxu0 %v1105_v0  ;;  %v335_v58 = vand.u32 4294901760, %v334_v52  ;;  %v348_v60 = vsub.f32 %v1239_v41, %v347_v54  ;;  %v999_v5 = vpack.c.bf16 %v347_v54, %v340_v49  ;;  %v966_v11 = vpack.c.bf16 %v1202_v9, %v1194_v63 }
  0x51   :  { %v342_v2 = vand.u32 4294901760, %v341_v59  ;;  %v969_v12 = vpack.c.bf16 %v1210_v21, %v1204_v13  ;;  %v972_v63 = vpack.c.bf16 %v1225_v31, %v1216_v24  ;;  %v200_v9 = vrot.slane %v1169_v19, %v1183_v33 }
  0x52   :  { %v960_v61 = vpack.c.bf16 %v335_v58, %v328_v56  ;;  %v349_v3 = vand.u32 4294901760, %v348_v60  ;;  %v195_v13 = vrot.slane %v1164_v15, %v1183_v33  ;;  %v205_v16 = vrot.slane %v1157_v10, %v1183_v33 }
  0x53   :  { %952 = vmatpush3.bf16.msra.mxu1 %v1234_v37  ;;  %988 = vmatpush3.bf16.msra.mxu0 %v1234_v37  ;;  %vm201_vm7 = vcmp.eq.s32.totalorder %v1155_v6, %v200_v9 }
  0x54   :  { %953 = vmatprep.subr.bf16.mxu1 %v1105_v0  ;;  %989 = vmatprep.subr.bf16.mxu0 %v1105_v0  ;;  %v963_v4 = vpack.c.bf16 %v349_v3, %v342_v2 }
  0x56   :  { %844 = vmatmul.mubr.f32.vlgmr.msra.gmra.mrb[0].mxu1 %v289_v45  ;;  %901 = vmatmul.mubr.f32.vlgmr.msra.gmra.mrb[0].mxu0 %v287_v25 }
  0x57   :  { %955 = vmatpush3.bf16.msra.mxu1 %v954_v46  ;;  %991 = vmatpush3.bf16.msra.mxu0 %v990_v47 }
  0x58   :  { %956 = vmatprep.subr.bf16.mxu1 %v1105_v0  ;;  %992 = vmatprep.subr.bf16.mxu0 %v1105_v0 }
  0x59   :  { %862 = vmatprep.mubr.msk.f32.mxu1 %vm1106_vm0, %v1107_v1  ;;  %919 = vmatprep.mubr.msk.f32.mxu0 %vm1106_vm0, %v1107_v1 }
  0x5b   :  { %958 = vmatpush3.bf16.msra.mxu1 %v957_v57  ;;  %994 = vmatpush3.bf16.msra.mxu0 %v993_v55 }
  0x5c   :  { %959 = vmatprep.subr.bf16.mxu1 %v1105_v0  ;;  %995 = vmatprep.subr.bf16.mxu0 %v1105_v0 }
  0x5f   :  { %961 = vmatpush3.bf16.msra.mxu1 %v960_v61  ;;  %997 = vmatpush3.bf16.msra.mxu0 %v996_v62 }
  0x60   :  { %962 = vmatprep.subr.bf16.mxu1 %v1105_v0  ;;  %998 = vmatprep.subr.bf16.mxu0 %v1105_v0 }
  0x63   :  { %964 = vmatpush3.bf16.msra.mxu1 %v963_v4  ;;  %1000 = vmatpush3.bf16.msra.mxu0 %v999_v5 }
  0x64   :  { %965 = vmatprep.subr.bf16.mxu1 %v1105_v0  ;;  %1001 = vmatprep.subr.bf16.mxu0 %v1105_v0 }
  0x66   :  { %863 = vmatmul.mubr.f32.vlgmr.msra.gmra.mrb[0].mxu1 %v1189_v53  ;;  %920 = vmatmul.mubr.f32.vlgmr.msra.gmra.mrb[0].mxu0 %v1189_v53 }
  0x67   :  { %967 = vmatpush3.bf16.msra.mxu1 %v966_v11  ;;  %1003 = vmatpush3.bf16.msra.mxu0 %v1200_v8  ;;  %v975_v8 = vpack.c.bf16 %v1239_v41, %v1231_v35 }
  0x68   :  { %968 = vmatprep.subr.bf16.mxu1 %v1105_v0  ;;  %1004 = vmatprep.subr.bf16.mxu0 %v1105_v0 }
  0x69   :  { %881 = vmatprep.mubr.msk.f32.mxu1 %vm1106_vm0, %v1107_v1  ;;  %938 = vmatprep.mubr.msk.f32.mxu0 %vm1106_vm0, %v1107_v1  ;;  %v190_v1 = vrot.slane %v1161_v14, %v1183_v33 }
  0x6b   :  { %970 = vmatpush3.bf16.msra.mxu1 %v969_v12  ;;  %1006 = vmatpush3.bf16.msra.mxu0 %v1208_v20  ;;  %vm191_vm6 = vcmp.eq.s32.totalorder %v1155_v6, %v190_v1 }
  0x6c   :  { %971 = vmatprep.subr.bf16.mxu1 %v1105_v0  ;;  %1007 = vmatprep.subr.bf16.mxu0 %v1105_v0 }
  0x6f   :  { %973 = vmatpush3.bf16.msra.mxu1 %v972_v63  ;;  %1009 = vmatpush3.bf16.msra.mxu0 %v1223_v30 }
  0x70   :  { %974 = vmatprep.subr.bf16.mxu1 %v1105_v0  ;;  %1010 = vmatprep.subr.bf16.mxu0 %v1105_v0  ;;  %v196_v0 = vsel %vm191_vm6, %v195_v13, 0.0 }
  0x73   :  { %976 = vmatpush3.bf16.msra.mxu1 %v975_v8  ;;  %1012 = vmatpush3.bf16.msra.mxu0 %v1234_v37 }
  0x76   :  { %882 = vmatmul.mubr.f32.vlgmr.msra.gmra.mrb[0].mxu1 %v1198_v7  ;;  %939 = vmatmul.mubr.f32.vlgmr.msra.gmra.mrb[0].mxu0 %v1189_v53  ;;  %v206_v7 = vsel %vm201_vm7, %v205_v16, 0.0 }
  0x77   :  { %v207_v17 = vadd.f32 %v206_v7, %v196_v0 }
 0x149   :  { %v490_v53 = vpop.f32.mrb[0].mxu1  ;;  %v745_v18 = vpop.f32.mrb[0].mxu0 }
 0x14a   :  { %v1013_v20 = vadd.f32 %v745_v18, %v490_v53  ;;  %v883_v14 = vpop.f32.mrb[1].mxu1  ;;  %v940_v21 = vpop.f32.mrb[1].mxu0 }
 0x14c   :  { %v749_v22 = vmul.f32 %v1013_v20, %v207_v17 }
 0x14e   :  { %v750_v19 = vrot.slane %v749_v22, 4 }
 0x150   :  { %v751_v23 = vadd.f32 %v750_v19, %v749_v22 }
 0x152   :  { %v752_v24 = vrot.slane %v751_v23, 2 }
 0x154   :  { %v753_v15 = vadd.f32 %v752_v24, %v751_v23 }
 0x156   :  { %v754_v10 = vrot.slane %v753_v15, 1 }
 0x158   :  { %v755_v33 = vadd.f32 %v754_v10, %v753_v15 }
 0x15a   :  { %756 = vst [vmem:[#allocation7] sm:$0x1] %v755_v33 }
 0x15b   :  { %1086 = shalt.err (!%p1083_p6)
}
 0x15c   :  { %s1087_s9 = scalar_lea.hbm %s1318_s2, 16 }
 0x15d   :  { %p1088_p7 = scmp.ne.s32.totalorder %s1318_s2, %s1087_s9  ;;  %p1091_p8 = scmp.lt.u32.totalorder %s1087_s9, %s1318_s2 }
 0x15f   :  { %p1093_p9 = pnand %p1091_p8, %p1088_p7 }
 0x161   :  { %1096 = shalt.err (!%p1093_p9)
}
 0x162   :  { %766 = dma.vmem_to_hbm [thread:$0]  %s764_s4, 16, %s1318_s2, [#allocation4]  }
 0x163   :  { %1101 = dma.done.wait [#allocation4], 16  }
 0x164   :  { %1102 = vsyncadd [#allocation4], 4294967280 }
 0x165   :  { %770 = vsyncpa [#allocation3], 1 }
 0x166   :  { %771 = vsyncpa [#allocation6], 1 }
 0x167   :  { %772 = vsyncpa [#allocation4], 1 }

</bundles_post_ra>
